<compile_context>
chip_gen: v6e
topology: v6e:2x2x1
jax: 0.10.0
libtpu: 0.0.40
codegen_flags: <defaults>
</compile_context>

<pallas_src>
import functools

import jax
import jax.numpy as jnp
from jax import lax
from jax.experimental import pallas as pl
from jax.experimental.pallas import tpu as pltpu

_LANE = 128


def _chip_profile():
    """Returns (tensorcores_to_split_over, target_input_block_bytes).

    v7x : 2 TCs, ~3.2 TB/s HBM -> 4 MiB blocks (DMA ~1.3 us >> 0.35 us step cost)
    v6e : 1 TC,  ~1.4 TB/s     -> 2 MiB blocks
    v5e : 1 TC,  ~0.8 TB/s     -> 1 MiB blocks (well inside 16 MiB scoped VMEM)
    v4/v5p (megacore)          -> 2 cores, 2 MiB blocks
    unknown                    -> conservative 1 core, 1 MiB
    """
    kind = ""
    try:
        kind = jax.devices()[0].device_kind.lower()
    except Exception:
        pass
    if "v7" in kind:
        return 2, 4 * 1024 * 1024
    if "v6" in kind:
        return 1, 2 * 1024 * 1024
    if "v5e" in kind or ("v5" in kind and "lite" in kind):
        return 1, 1 * 1024 * 1024
    if "v4" in kind or "v5p" in kind or "v5" in kind:
        return 2, 2 * 1024 * 1024
    return 1, 1 * 1024 * 1024


def _hinge_kernel(x_ref, o_ref, acc_ref, *, mode, total_rows, tile_rows,
                  blocks_per_core, split_cores, fold, mask_rows):
    """x_ref:  (tile_rows, 128) lane-dense tile in native dtype.
    o_ref:   (1, 1) f32 SMEM partial-sum slot (one per core slot).
    acc_ref: (8, 128) f32 VMEM accumulator (or (tile_rows, 128) for tiny inputs)."""
    if split_cores:
        c = pl.program_id(0)          # core slot ("parallel")
        j = pl.program_id(1)          # row-block within this core ("arbitrary")
        last_j = pl.num_programs(1) - 1
    else:
        c = 0
        j = pl.program_id(0)
        last_j = pl.num_programs(0) - 1

    @pl.when(j == 0)
    def _():
        acc_ref[...] = jnp.zeros_like(acc_ref)

    x = x_ref[...].astype(jnp.float32)
    if mode == "g":          # -mean(x)
        v = -x
    elif mode == "real":     # mean(relu(1 - x))
        v = jnp.maximum(1.0 - x, 0.0)
    else:                    # mean(relu(1 + x))
        v = jnp.maximum(1.0 + x, 0.0)

    if mask_rows:
        # Only compiled in when the last block is ragged or a core slot has a
        # clamped dummy block; zeroes rows past the logical end of the input.
        row_start = (c * blocks_per_core + j) * tile_rows
        row_ids = row_start + lax.broadcasted_iota(jnp.int32, v.shape, 0)
        v = jnp.where(row_ids < total_rows, v, 0.0)

    # Steady state: fold the block into one (8, 128) vreg tile with pure VPU
    # adds; no full-block accumulator traffic, no per-step XLU reduce.
    if fold:
        acc_ref[...] += v.reshape(tile_rows // 8, 8, _LANE).sum(axis=0)
    else:                    # tiny input (tile_rows not a multiple of 8)
        acc_ref[...] += v

    # Epilogue: one cross-sublane/lane reduction + scalar SMEM store per core.
    @pl.when(j == last_j)
    def _():
        o_ref[0, 0] = jnp.sum(acc_ref[...])


def hinge_loss(x, for_real=True, for_G=False):
    """Pallas equivalent of hinge_loss.forward(input, for_real, for_G)."""
    mode = "g" if for_G else ("real" if for_real else "fake")
    out_dtype = x.dtype
    count = int(x.size)
    if count == 0:
        # torch.mean of an empty tensor is NaN.
        return jnp.full((), jnp.nan, dtype=out_dtype)

    # Lane-dense view: (rows, 128).  Metadata-only when count % 128 == 0;
    # otherwise pad the short tail once with the mode-neutral value
    # (relu(1-1)=0, relu(1+(-1))=0, -(0)=0) so padded elements contribute 0.
    flat = x.reshape(-1)
    pad = (-count) % _LANE
    if pad:
        neutral = {"g": 0.0, "real": 1.0, "fake": -1.0}[mode]
        flat = jnp.pad(flat, (0, pad), constant_values=neutral)
    x2 = flat.reshape(-1, _LANE)
    R = x2.shape[0]

    num_cores, target_block_bytes = _chip_profile()

    itemsize = jnp.dtype(x2.dtype).itemsize
    row_align = max(8, 32 // itemsize)           # 8 rows f32, 16 bf16, 32 int8/fp8
    rows_by_budget = target_block_bytes // (_LANE * itemsize)
    rows_by_budget = max(row_align, (rows_by_budget // row_align) * row_align)

    tile_rows = R if R <= rows_by_budget else rows_by_budget
    nb = -(-R // tile_rows)                      # row blocks covering the input
    if nb < num_cores:
        num_cores = 1                            # no point splitting tiny inputs
    bpc = -(-nb // num_cores)                    # row blocks per core slot
    fold = (tile_rows % 8 == 0)
    mask_rows = (R % tile_rows != 0) or (num_cores * bpc != nb)

    kernel = functools.partial(
        _hinge_kernel, mode=mode, total_rows=R, tile_rows=tile_rows,
        blocks_per_core=bpc, split_cores=(num_cores > 1), fold=fold,
        mask_rows=mask_rows)

    acc_rows = 8 if fold else tile_rows
    scratch_shapes = [pltpu.VMEM((acc_rows, _LANE), jnp.float32)]

    if num_cores > 1:
        grid = (num_cores, bpc)
        if num_cores * bpc == nb:
            in_map = lambda c, j: (c * bpc + j, 0)
        else:
            # Odd block count: the one dummy block re-reads a valid tile whose
            # contribution is zeroed by the in-kernel row mask.
            in_map = lambda c, j: (jnp.minimum(c * bpc + j, nb - 1), 0)
        out_map = lambda c, j: (c, 0)
        dims = ("parallel", "arbitrary")
    else:
        grid = (nb,)
        in_map = lambda j: (j, 0)
        out_map = lambda j: (0, 0)
        dims = ("arbitrary",)

    partials = pl.pallas_call(
        kernel,
        out_shape=jax.ShapeDtypeStruct((num_cores, 1), jnp.float32),
        grid=grid,
        in_specs=[pl.BlockSpec((tile_rows, _LANE), in_map)],
        out_specs=pl.BlockSpec((1, 1), out_map, memory_space=pltpu.SMEM),
        scratch_shapes=scratch_shapes,
        compiler_params=pltpu.CompilerParams(dimension_semantics=dims),
    )(x2)

    return (jnp.sum(partials) * jnp.float32(1.0 / count)).astype(out_dtype)


def _hinge_loss_ref(x, for_real=True, for_G=False):
    x = x.astype(jnp.float32)
    if for_G:
        return -jnp.mean(x)
    elif for_real:
        return jnp.mean(jnp.maximum(1.0 - x, 0.0))
    else:
        return jnp.mean(jnp.maximum(1.0 + x, 0.0))


if __name__ == "__main__":
    key = jax.random.PRNGKey(0)
    # Discriminator-logit-like input, NCHW.
    x = jax.random.normal(key, (2, 4, 16, 16), dtype=jnp.float32)

    cases = ({"for_real": True, "for_G": False},   # real branch
             {"for_real": False, "for_G": False},  # fake branch
             {"for_real": True, "for_G": True})    # generator branch

    for kwargs in cases:
        got = hinge_loss(x, **kwargs)
        jax.block_until_ready(got)
        want = _hinge_loss_ref(x, **kwargs)
        assert jnp.allclose(got, want, atol=1e-5, rtol=1e-5), (kwargs, got, want)

    # Ragged element count (945): exercises the neutral-value tail-pad path.
    xr = jax.random.normal(jax.random.PRNGKey(1), (3, 5, 7, 9), dtype=jnp.float32)
    for kwargs in cases:
        got = hinge_loss(xr, **kwargs)
        jax.block_until_ready(got)
        want = _hinge_loss_ref(xr, **kwargs)
        assert jnp.allclose(got, want, atol=1e-5, rtol=1e-5), (kwargs, got, want)

    # Native bf16 input: read bf16 from HBM, cast to f32 only inside the kernel.
    xb = jax.random.normal(jax.random.PRNGKey(2), (2, 4, 16, 16), dtype=jnp.bfloat16)
    got = hinge_loss(xb, for_real=True, for_G=False)
    jax.block_until_ready(got)
    want = _hinge_loss_ref(xb, for_real=True, for_G=False)
    assert jnp.allclose(got.astype(jnp.float32), want, atol=1e-2, rtol=1e-2), (got, want)

    print("KERNEL_OK")
</pallas_src>

<mosaic_0001>
module attributes {stable_mosaic.version = 11 : i64} {
  func.func @_hinge_kernel(%arg0: i32, %arg1: memref<16x128xf32, #tpu.memory_space<vmem>>, %arg2: memref<1x1xf32, #tpu.memory_space<smem>>, %arg3: memref<8x128xf32, #tpu.memory_space<vmem>>) attributes {dimension_semantics = [#tpu.dimension_semantics<arbitrary>], iteration_bounds = array<i64: 1>, scalar_prefetch = 0 : i64, scratch_operands = 1 : i64, tpu.core_type = #tpu.core_type<tc>, window_params = [{transform_indices = @transform_0, window_bounds = array<i64: 16, 128>}, {transform_indices = @transform_1, window_bounds = array<i64: 1, 1>}]} {
    %c0_i32 = arith.constant 0 : i32
    %0 = arith.cmpi eq, %arg0, %c0_i32 : i32
    %1 = arith.extui %0 : i1 to i32
    %c0_i32_0 = arith.constant 0 : i32
    %2 = arith.cmpi ne, %1, %c0_i32_0 : i32
    scf.if %2 {
      %cst_10 = arith.constant 0.000000e+00 : f32
      %16 = vector.broadcast %cst_10 : f32 to vector<8x128xf32>
      %c0_11 = arith.constant 0 : index
      %c0_12 = arith.constant 0 : index
      %17 = vector.load %arg3[%c0_11, %c0_12] : memref<8x128xf32, #tpu.memory_space<vmem>>, vector<8x128xf32>
      tpu.vector_store %arg3[%c0_11, %c0_12], %16 {strides = array<i32>} : memref<8x128xf32, #tpu.memory_space<vmem>>, vector<8x128xf32>,
    } else {
    }
    %c0 = arith.constant 0 : index
    %c0_1 = arith.constant 0 : index
    %3 = vector.load %arg1[%c0, %c0_1] : memref<16x128xf32, #tpu.memory_space<vmem>>, vector<16x128xf32>
    %cst = arith.constant 1.000000e+00 : f32
    %4 = vector.broadcast %cst : f32 to vector<16x128xf32>
    %5 = arith.subf %4, %3 : vector<16x128xf32>
    %cst_2 = arith.constant 0.000000e+00 : f32
    %6 = vector.broadcast %cst_2 : f32 to vector<16x128xf32>
    %7 = arith.maximumf %5, %6 : vector<16x128xf32>
    %c0_3 = arith.constant 0 : index
    %c0_4 = arith.constant 0 : index
    %8 = vector.load %arg3[%c0_3, %c0_4] : memref<8x128xf32, #tpu.memory_space<vmem>>, vector<8x128xf32>
    %9 = vector.shape_cast %7 : vector<16x128xf32> to vector<2x8x128xf32>
    %cst_5 = arith.constant dense<0.000000e+00> : vector<8x128xf32>
    %10 = vector.multi_reduction <add>, %9, %cst_5 [0] : vector<2x8x128xf32> to vector<8x128xf32>
    %11 = arith.addf %8, %10 : vector<8x128xf32>
    %c0_6 = arith.constant 0 : index
    %c0_7 = arith.constant 0 : index
    %12 = vector.load %arg3[%c0_6, %c0_7] : memref<8x128xf32, #tpu.memory_space<vmem>>, vector<8x128xf32>
    tpu.vector_store %arg3[%c0_6, %c0_7], %11 {strides = array<i32>} : memref<8x128xf32, #tpu.memory_space<vmem>>, vector<8x128xf32>,
    %c0_i32_8 = arith.constant 0 : i32
    %13 = arith.cmpi eq, %arg0, %c0_i32_8 : i32
    %14 = arith.extui %13 : i1 to i32
    %c0_i32_9 = arith.constant 0 : i32
    %15 = arith.cmpi ne, %14, %c0_i32_9 : i32
    scf.if %15 {
      %c0_10 = arith.constant 0 : index
      %c0_11 = arith.constant 0 : index
      %16 = vector.load %arg3[%c0_10, %c0_11] : memref<8x128xf32, #tpu.memory_space<vmem>>, vector<8x128xf32>
      %17 = vector.shape_cast %16 : vector<8x128xf32> to vector<1x8x128xf32>
      %cst_12 = arith.constant dense<0.000000e+00> : vector<1xf32>
      %18 = vector.multi_reduction <add>, %17, %cst_12 [1, 2] : vector<1x8x128xf32> to vector<1xf32>
      %19 = vector.shape_cast %18 : vector<1xf32> to vector<1x1x1xf32>
      %20 = vector.extract %19[0, 0, 0] : f32 from vector<1x1x1xf32>
      %c0_13 = arith.constant 0 : index
      %c0_14 = arith.constant 0 : index
      %21 = memref.load %arg2[%c0_13, %c0_14] : memref<1x1xf32, #tpu.memory_space<smem>>
      memref.store %20, %arg2[%c0_13, %c0_14] : memref<1x1xf32, #tpu.memory_space<smem>>
    } else {
    }
    return
  }
  func.func @transform_0(%arg0: i32) -> (i32, i32) {
    %c0_i32 = arith.constant 0 : i32
    %c0_i32_0 = arith.constant 0 : i32
    return %arg0, %c0_i32 : i32, i32
  }
  func.func @transform_1(%arg0: i32) -> (i32, i32) {
    %c0_i32 = arith.constant 0 : i32
    %c0_i32_0 = arith.constant 0 : i32
    %c0_i32_1 = arith.constant 0 : i32
    return %c0_i32, %c0_i32_0 : i32, i32
  }
}

</mosaic_0001>

<bundles_post_ra>
// kernel: tpu_custom_call.1
= control target key start
LH: loop header
LB: loop body
LE: loop exit
PB: predicated region body
PF: predicated region fallthrough
CT: control target
= control target key end

     0   :  { %6 = vsyncpa [#allocation4], 0  ;;  %s125_s0 = inlined_call_operand.hbm [shape: f32[16,128], index: 0, kind: input, shape index: {}]   ;;  %s126_s1 = inlined_call_operand.hbm [shape: f32[1,1], index: 1, kind: output, shape index: {}]  }
   0x1   :  { %7 = vsyncpa [#allocation5], 0  ;;  %s105_s6 = smov [#allocation3]  }
   0x2   :  { %s13_s7 = sshll.u32 %s105_s6, 4  ;;  %s14_s7 = int_to_ptr.vmem [resolvable:$true] %s13_s7 }
   0x3   :  { %s81_s8 = scalar_lea.vmem %s14_s7, 256  ;;  %p86_p1 = scmp.lt.s32.totalorder %s14_s7, %s14_s7 }
   0x4   :  { %p82_p0 = scmp.ne.s32.totalorder %s14_s7, %s81_s8  ;;  %p87_p2 = scmp.lt.s32.totalorder %s81_s8, %s81_s8 }
   0x6   :  { %p88_p3 = por %p87_p2, %p86_p1 }
   0x8   :  { %p89_p4 = pnand %p88_p3, %p82_p0 }
   0xa   :  { %92 = shalt.err (!%p89_p4)
}
   0xb   :  { %s106_s9 = smov 128   ;;  %s107_s10 = smov 8  }
   0xc   :  { %19 = dma.hbm_to_vmem [thread:$0]  %s125_s0, 256, %s14_s7, [#allocation4], %s106_s9, %s106_s9, %s107_s10  }
   0xd   :  { %101 = dma.done.wait [#allocation4], 256  }
   0xe   :  { %102 = vsyncadd [#allocation4], 4294967040  ;;  %v28_v0 = vld [vmem:[#allocation3] sm:$0xff]  ;;  %v29_v1 = vld [vmem:[#allocation3 + $0x8] sm:$0xff]  ;;  %s108_s0 = smov [#allocation6]  }
   0xf   :  { %v30_v2 = vsub.f32 1.0, %v28_v0  ;;  %v31_v3 = vsub.f32 1.0, %v29_v1 }
  0x11   :  { %v32_v4 = vmax.f32 %v30_v2, 0.0  ;;  %v33_v5 = vmax.f32 %v31_v3, 0.0 }
  0x13   :  { %v35_v6 = vadd.f32 %v33_v5, %v32_v4 }
  0x15   :  { %42 = vadd.xlane.f32.xlu0 %v35_v6 }
  0x9e   :  { %v43_v7 = vpop.xlane.xlu0 %42 }
  0x9f   :  { %v44_v8 = vrot.slane %v43_v7, 4 }
  0xa1   :  { %v45_v9 = vadd.f32 %v44_v8, %v43_v7 }
  0xa3   :  { %v46_v10 = vrot.slane %v45_v9, 2 }
  0xa5   :  { %v47_v11 = vadd.f32 %v46_v10, %v45_v9 }
  0xa7   :  { %v48_v12 = vrot.slane %v47_v11, 1 }
  0xa9   :  { %v49_v13 = vadd.f32 %v48_v12, %v47_v11 }
  0xab   :  { %67 = vpush %v49_v13 }
  0xdc   :  { %s68_s13 = spop %67 }
  0xdd   :  { %52 = sst [smem:[#allocation6]] %s68_s13 }
  0xde   :  { %60 = dma.smem_to_hbm %s108_s0, 16, %s126_s1, [#allocation5]  }
  0xdf   :  { %103 = dma.done.wait [#allocation5], 16  }
  0xe0   :  { %104 = vsyncadd [#allocation5], 4294967280 }
  0xe1   :  { %64 = sfence }
  0xe2   :  { %65 = vsyncpa [#allocation4], 1 }
  0xe3   :  { %66 = vsyncpa [#allocation5], 1 }

</bundles_post_ra>
